<compile_context>
chip_gen: v6e
topology: v6e:2x2x1
jax: 0.10.0
libtpu: 0.0.40
codegen_flags: <defaults>
</compile_context>

<pallas_src>
import jax
import jax.numpy as jnp
from jax.experimental import pallas as pl
from jax.experimental.pallas import tpu as pltpu


_VMEM_LIMIT = 32 * 1024 * 1024  # explicit scoped-VMEM request; safe on v5e/v6e/v7x


def _pick_tile(dim, cap, align):
    """Largest tile <= cap that evenly divides dim (full dim if dim <= cap)."""
    if dim <= cap:
        return dim
    best = None
    t = align
    while t <= cap:
        if dim % t == 0:
            best = t
        t += align
    if best is None:
        raise ValueError(
            f"dim={dim} has no {align}-aligned divisor <= {cap}; pad the input."
        )
    return best


# ----------------------------------------------------------------------------
# Kernel 1 (fused): doc_logits = q @ d^T  +  online-LSE cross-entropy epilogue.
# grid = (B/tb, N/tn, H/th), reduction (H) last.  The f32 output block is the
# resident accumulator; when the k (H) loop for a tile finishes, the completed
# (tb, tn) logits tile feeds an online log-sum-exp update over the N axis, and
# the per-query NLL is emitted when the last N tile of a B tile is done.
# ----------------------------------------------------------------------------
def scores_ce_kernel(q_ref, d_ref, labels_ref, o_ref, loss_ref, m_sc, l_sc, p_sc):
    j = pl.program_id(1)                     # N-tile index
    k = pl.program_id(2)                     # H-tile index (reduction)

    # q tile: (tb, th) bf16, d tile: (tn, th) bf16 -> (tb, tn) f32 on the MXU.
    partial = jax.lax.dot_general(
        q_ref[...],
        d_ref[...],
        dimension_numbers=(((1,), (1,)), ((), ())),  # contract last dims, no .T
        preferred_element_type=jnp.float32,
    )

    @pl.when(k == 0)
    def _first():
        o_ref[...] = partial                 # write directly, no zero-init + add

    @pl.when(k != 0)
    def _accumulate():
        o_ref[...] += partial

    # Cross-entropy epilogue on the completed (tb, tn) logits tile.
    @pl.when(k == pl.num_programs(2) - 1)
    def _ce_epilogue():
        @pl.when(j == 0)
        def _init():
            m_sc[...] = jnp.full_like(m_sc, -jnp.inf)
            l_sc[...] = jnp.zeros_like(l_sc)
            p_sc[...] = jnp.zeros_like(p_sc)

        logits = o_ref[...]                  # (tb, tn) f32, already in VMEM
        tn = logits.shape[-1]
        col = jax.lax.broadcasted_iota(jnp.int32, logits.shape, 1) + j * tn
        hit = col == labels_ref[...]         # (tb, tn) bool, labels (tb, 1)
        p_sc[...] += jnp.sum(jnp.where(hit, logits, 0.0), axis=-1, keepdims=True)

        m_old = m_sc[...]
        m_new = jnp.maximum(m_old, jnp.max(logits, axis=-1, keepdims=True))
        l_sc[...] = l_sc[...] * jnp.exp(m_old - m_new) + jnp.sum(
            jnp.exp(logits - m_new), axis=-1, keepdims=True
        )
        m_sc[...] = m_new

        @pl.when(j == pl.num_programs(1) - 1)
        def _finalize():
            # per-query negative log-likelihood: logsumexp - picked logit.
            loss_ref[...] = (m_sc[...] + jnp.log(l_sc[...])) - p_sc[...]


def retriever_scores_and_loss(q, d, labels, *, tb=None, tn=None, th=None):
    B, H = q.shape
    N, H2 = d.shape
    assert H == H2, "query/doc hidden dims must match"
    assert labels.shape == (B,), "labels must be (B,)"

    # MXU/HBM-matched tiles; tb multiple of 16 for bf16 sublane packing.
    if tb is None:
        tb_cap = 512
        if B >= 32:
            tb_cap = min(tb_cap, B // 2)     # keep >=2 parallel B tiles (v7x megacore)
        tb = _pick_tile(B, max(tb_cap, 16), 16)
    if tn is None:
        tn = _pick_tile(N, 2048, 128)
    if th is None:
        th = _pick_tile(H, 1024, 128)        # th == H when H <= 1024 (contiguous d DMA)
    assert B % tb == 0 and N % tn == 0 and H % th == 0, "shapes must tile evenly"

    qb = q if q.dtype == jnp.bfloat16 else q.astype(jnp.bfloat16)
    db = d if d.dtype == jnp.bfloat16 else d.astype(jnp.bfloat16)
    labels2d = labels.reshape(B, 1).astype(jnp.int32)
    # TODO(synk): out-of-range labels silently contribute 0 as the picked logit
    # (PyTorch CrossEntropyLoss would raise); validate labels upstream.

    grid = (B // tb, N // tn, H // th)
    doc_logits, per_query_nll = pl.pallas_call(
        scores_ce_kernel,
        out_shape=(
            jax.ShapeDtypeStruct((B, N), jnp.float32),   # doc_logits (for predict)
            jax.ShapeDtypeStruct((B, 1), jnp.float32),   # per-query NLL
        ),
        grid_spec=pltpu.PrefetchScalarGridSpec(
            num_scalar_prefetch=0,
            grid=grid,
            in_specs=[
                pl.BlockSpec((tb, th), lambda i, j, k: (i, k)),
                pl.BlockSpec((tn, th), lambda i, j, k: (j, k)),
                pl.BlockSpec((tb, 1), lambda i, j, k: (i, 0)),
            ],
            out_specs=[
                pl.BlockSpec((tb, tn), lambda i, j, k: (i, j)),
                pl.BlockSpec((tb, 1), lambda i, j, k: (i, 0)),
            ],
            scratch_shapes=[
                pltpu.VMEM((tb, 1), jnp.float32),   # running max m
                pltpu.VMEM((tb, 1), jnp.float32),   # running sum l
                pltpu.VMEM((tb, 1), jnp.float32),   # picked (label) logit
            ],
        ),
        compiler_params=pltpu.CompilerParams(
            # N carries the LSE accumulators -> 'arbitrary'; B is the parallel axis.
            dimension_semantics=("parallel", "arbitrary", "arbitrary"),
            vmem_limit_bytes=_VMEM_LIMIT,
        ),
    )(qb, db, labels2d)
    return doc_logits, per_query_nll


# ----------------------------------------------------------------------------
# Kernel 2 (fallback): standalone cross-entropy over arbitrary logits.
# Row-parallel over B (uses both v7x TensorCores), online-LSE over N.
# ----------------------------------------------------------------------------
def ce_kernel(logits_ref, labels_ref, loss_ref, m_sc, l_sc, p_sc):
    j = pl.program_id(1)

    @pl.when(j == 0)
    def _init():
        m_sc[...] = jnp.full_like(m_sc, -jnp.inf)
        l_sc[...] = jnp.zeros_like(l_sc)
        p_sc[...] = jnp.zeros_like(p_sc)

    logits = logits_ref[...]                       # (tb, tn) f32
    tn = logits.shape[-1]
    col = jax.lax.broadcasted_iota(jnp.int32, logits.shape, 1) + j * tn
    hit = col == labels_ref[...]
    p_sc[...] += jnp.sum(jnp.where(hit, logits, 0.0), axis=-1, keepdims=True)

    m_old = m_sc[...]
    m_new = jnp.maximum(m_old, jnp.max(logits, axis=-1, keepdims=True))
    l_sc[...] = l_sc[...] * jnp.exp(m_old - m_new) + jnp.sum(
        jnp.exp(logits - m_new), axis=-1, keepdims=True
    )
    m_sc[...] = m_new

    @pl.when(j == pl.num_programs(1) - 1)
    def _finalize():
        loss_ref[...] = (m_sc[...] + jnp.log(l_sc[...])) - p_sc[...]


def cross_entropy_loss(logits, labels, *, tb=None, tn=None):
    B, N = logits.shape
    if tb is None:
        tb = _pick_tile(B, 256, 8)
    if tn is None:
        tn = _pick_tile(N, 2048, 128)
    assert B % tb == 0 and N % tn == 0, "shapes must tile evenly for the CE kernel"
    labels2d = labels.reshape(B, 1).astype(jnp.int32)

    per_query = pl.pallas_call(
        ce_kernel,
        out_shape=jax.ShapeDtypeStruct((B, 1), jnp.float32),
        grid_spec=pltpu.PrefetchScalarGridSpec(
            num_scalar_prefetch=0,
            grid=(B // tb, N // tn),
            in_specs=[
                pl.BlockSpec((tb, tn), lambda i, j: (i, j)),
                pl.BlockSpec((tb, 1), lambda i, j: (i, 0)),
            ],
            out_specs=pl.BlockSpec((tb, 1), lambda i, j: (i, 0)),
            scratch_shapes=[
                pltpu.VMEM((tb, 1), jnp.float32),
                pltpu.VMEM((tb, 1), jnp.float32),
                pltpu.VMEM((tb, 1), jnp.float32),
            ],
        ),
        compiler_params=pltpu.CompilerParams(
            dimension_semantics=("parallel", "arbitrary"),
            vmem_limit_bytes=_VMEM_LIMIT,
        ),
    )(logits, labels2d)
    return jnp.mean(per_query)  # CrossEntropyLoss default reduction='mean'


# ----------------------------------------------------------------------------
# BaseRetriever equivalent (forward + compute_loss + predict)
# ----------------------------------------------------------------------------
class BaseRetrieverPallas:
    def __init__(self, doc_embeddings, retriever_topk=10):
        # "documents" are represented by their embedding matrix [N, H]; the
        # doc-id string list / dict bookkeeping of the PyTorch class stays on host.
        self.doc_emb = doc_embeddings
        # Cast once; every forward re-uses the bf16 copy (halves the d HBM stream).
        self.doc_emb_bf16 = doc_embeddings.astype(jnp.bfloat16)
        self.topk = retriever_topk
        self._cached_per_query_nll = None

    def forward(self, query_emb, labels):
        doc_logits, per_query_nll = retriever_scores_and_loss(
            query_emb, self.doc_emb_bf16, labels
        )
        self._cached_per_query_nll = per_query_nll
        return doc_logits, labels

    def compute_loss(self, logits, labels):
        # non-Albert/Bert branch: plain CrossEntropyLoss (fused result if available).
        # TODO(synk): Albert/Bert branch (top-k re-indexed CE with label injection)
        # is data-dependent host-side reindexing; not implemented as a kernel.
        if self._cached_per_query_nll is not None:
            return jnp.mean(self._cached_per_query_nll)
        return cross_entropy_loss(logits, labels)

    def predict(self, doc_logits, topk=-1):
        # per-query top-k over doc logits; doc-id string mapping stays on host.
        if topk == -1:
            topk = 100
        k = min(topk, doc_logits.shape[1])
        values, indices = jax.lax.top_k(doc_logits, k)
        return values, indices

    def retrieve(self, query_emb, labels, mode="train"):
        doc_logits, doc_labels = self.forward(query_emb, labels)
        cand_scores, cand_idx = self.predict(doc_logits, self.topk)
        if mode == "train":
            loss = self.compute_loss(doc_logits, doc_labels)
        else:
            loss = jnp.float32(0.0)
        return loss, doc_logits, cand_scores, cand_idx


if __name__ == "__main__":
    B, H, N = 16, 256, 512          # queries, hidden dim, number of documents

    key = jax.random.PRNGKey(0)
    kq, kd, kl = jax.random.split(key, 3)
    query_emb = jax.random.normal(kq, (B, H), dtype=jnp.float32)
    doc_emb = jax.random.normal(kd, (N, H), dtype=jnp.float32)
    labels = jax.random.randint(kl, (B,), 0, N, dtype=jnp.int32)

    retriever = BaseRetrieverPallas(doc_emb, retriever_topk=10)
    loss, doc_logits, cand_scores, cand_idx = retriever.retrieve(
        query_emb, labels, mode="train"
    )
    jax.block_until_ready((loss, doc_logits, cand_scores, cand_idx))

    # Reference 1: scores (bf16 inputs, f32 accumulation, same as the kernel).
    ref_logits = jax.lax.dot_general(
        query_emb.astype(jnp.bfloat16),
        doc_emb.astype(jnp.bfloat16),
        dimension_numbers=(((1,), (1,)), ((), ())),
        preferred_element_type=jnp.float32,
    )
    assert jnp.allclose(doc_logits, ref_logits, atol=2e-2, rtol=2e-2), "logits mismatch"

    # Reference 2: cross-entropy on the kernel's own logits (isolates CE math).
    ref_loss = jnp.mean(
        jax.nn.logsumexp(doc_logits, axis=-1)
        - doc_logits[jnp.arange(B), labels]
    )
    assert jnp.allclose(loss, ref_loss, atol=1e-4, rtol=1e-4), "fused loss mismatch"

    # Also exercise the standalone (fallback) CE kernel.
    loss_standalone = cross_entropy_loss(doc_logits, labels)
    jax.block_until_ready(loss_standalone)
    assert jnp.allclose(loss_standalone, ref_loss, atol=1e-4, rtol=1e-4), (
        "standalone CE loss mismatch"
    )

    print("KERNEL_OK")
</pallas_src>

<mosaic_0001>
module attributes {stable_mosaic.version = 11 : i64} {
  func.func @scores_ce_kernel(%arg0: i32, %arg1: i32, %arg2: i32, %arg3: memref<16x256xbf16, #tpu.memory_space<vmem>>, %arg4: memref<512x256xbf16, #tpu.memory_space<vmem>>, %arg5: memref<16x1xi32, #tpu.memory_space<vmem>>, %arg6: memref<16x512xf32, #tpu.memory_space<vmem>>, %arg7: memref<16x1xf32, #tpu.memory_space<vmem>>, %arg8: memref<16x1xf32, #tpu.memory_space<vmem>>, %arg9: memref<16x1xf32, #tpu.memory_space<vmem>>, %arg10: memref<16x1xf32, #tpu.memory_space<vmem>>) attributes {dimension_semantics = [#tpu.dimension_semantics<parallel>, #tpu.dimension_semantics<arbitrary>, #tpu.dimension_semantics<arbitrary>], iteration_bounds = array<i64: 1, 1, 1>, scalar_prefetch = 0 : i64, scratch_operands = 3 : i64, tpu.core_type = #tpu.core_type<tc>, window_params = [{transform_indices = @transform_0, window_bounds = array<i64: 16, 256>}, {transform_indices = @transform_1, window_bounds = array<i64: 512, 256>}, {transform_indices = @transform_2, window_bounds = array<i64: 16, 1>}, {transform_indices = @transform_3, window_bounds = array<i64: 16, 512>}, {transform_indices = @transform_4, window_bounds = array<i64: 16, 1>}]} {
    %c0 = arith.constant 0 : index
    %c0_0 = arith.constant 0 : index
    %0 = vector.load %arg3[%c0, %c0_0] : memref<16x256xbf16, #tpu.memory_space<vmem>>, vector<16x256xbf16>
    %c0_1 = arith.constant 0 : index
    %c0_2 = arith.constant 0 : index
    %1 = vector.load %arg4[%c0_1, %c0_2] : memref<512x256xbf16, #tpu.memory_space<vmem>>, vector<512x256xbf16>
    %cst = arith.constant dense<0.000000e+00> : vector<16x512xf32>
    %2 = tpu.matmul %0, %1, %cst {dimension_numbers = #tpu.dot_dimension_numbers<[1], [1], [0], [0], [0, 0, 1, 0], [], []>} : vector<16x256xbf16>, vector<512x256xbf16>, vector<16x512xf32> -> vector<16x512xf32>
    %c0_i32 = arith.constant 0 : i32
    %3 = arith.cmpi eq, %arg2, %c0_i32 : i32
    %4 = arith.extui %3 : i1 to i32
    %c0_i32_3 = arith.constant 0 : i32
    %5 = arith.cmpi ne, %4, %c0_i32_3 : i32
    scf.if %5 {
      %c0_8 = arith.constant 0 : index
      %c0_9 = arith.constant 0 : index
      %12 = vector.load %arg6[%c0_8, %c0_9] : memref<16x512xf32, #tpu.memory_space<vmem>>, vector<16x512xf32>
      tpu.vector_store %arg6[%c0_8, %c0_9], %2 {strides = array<i32>} : memref<16x512xf32, #tpu.memory_space<vmem>>, vector<16x512xf32>,
    } else {
    }
    %c0_i32_4 = arith.constant 0 : i32
    %6 = arith.cmpi ne, %arg2, %c0_i32_4 : i32
    %7 = arith.extui %6 : i1 to i32
    %c0_i32_5 = arith.constant 0 : i32
    %8 = arith.cmpi ne, %7, %c0_i32_5 : i32
    scf.if %8 {
      %c0_8 = arith.constant 0 : index
      %c0_9 = arith.constant 0 : index
      %12 = vector.load %arg6[%c0_8, %c0_9] : memref<16x512xf32, #tpu.memory_space<vmem>>, vector<16x512xf32>
      %13 = arith.addf %12, %2 : vector<16x512xf32>
      %c0_10 = arith.constant 0 : index
      %c0_11 = arith.constant 0 : index
      %14 = vector.load %arg6[%c0_10, %c0_11] : memref<16x512xf32, #tpu.memory_space<vmem>>, vector<16x512xf32>
      tpu.vector_store %arg6[%c0_10, %c0_11], %13 {strides = array<i32>} : memref<16x512xf32, #tpu.memory_space<vmem>>, vector<16x512xf32>,
    } else {
    }
    %c0_i32_6 = arith.constant 0 : i32
    %9 = arith.cmpi eq, %arg2, %c0_i32_6 : i32
    %10 = arith.extui %9 : i1 to i32
    %c0_i32_7 = arith.constant 0 : i32
    %11 = arith.cmpi ne, %10, %c0_i32_7 : i32
    scf.if %11 {
      %c0_i32_8 = arith.constant 0 : i32
      %12 = arith.cmpi eq, %arg1, %c0_i32_8 : i32
      %13 = arith.extui %12 : i1 to i32
      %c0_i32_9 = arith.constant 0 : i32
      %14 = arith.cmpi ne, %13, %c0_i32_9 : i32
      scf.if %14 {
        %cst_32 = arith.constant 0xFF800000 : f32
        %49 = vector.broadcast %cst_32 : f32 to vector<16x1xf32>
        %c0_33 = arith.constant 0 : index
        %c0_34 = arith.constant 0 : index
        %50 = vector.load %arg8[%c0_33, %c0_34] : memref<16x1xf32, #tpu.memory_space<vmem>>, vector<16x1xf32>
        tpu.vector_store %arg8[%c0_33, %c0_34], %49 {strides = array<i32>} : memref<16x1xf32, #tpu.memory_space<vmem>>, vector<16x1xf32>,
        %cst_35 = arith.constant 0.000000e+00 : f32
        %51 = vector.broadcast %cst_35 : f32 to vector<16x1xf32>
        %c0_36 = arith.constant 0 : index
        %c0_37 = arith.constant 0 : index
        %52 = vector.load %arg9[%c0_36, %c0_37] : memref<16x1xf32, #tpu.memory_space<vmem>>, vector<16x1xf32>
        tpu.vector_store %arg9[%c0_36, %c0_37], %51 {strides = array<i32>} : memref<16x1xf32, #tpu.memory_space<vmem>>, vector<16x1xf32>,
        %cst_38 = arith.constant 0.000000e+00 : f32
        %53 = vector.broadcast %cst_38 : f32 to vector<16x1xf32>
        %c0_39 = arith.constant 0 : index
        %c0_40 = arith.constant 0 : index
        %54 = vector.load %arg10[%c0_39, %c0_40] : memref<16x1xf32, #tpu.memory_space<vmem>>, vector<16x1xf32>
        tpu.vector_store %arg10[%c0_39, %c0_40], %53 {strides = array<i32>} : memref<16x1xf32, #tpu.memory_space<vmem>>, vector<16x1xf32>,
      } else {
      }
      %c0_10 = arith.constant 0 : index
      %c0_11 = arith.constant 0 : index
      %15 = vector.load %arg6[%c0_10, %c0_11] : memref<16x512xf32, #tpu.memory_space<vmem>>, vector<16x512xf32>
      %16 = tpu.iota {dimensions = array<i32: 1>} : vector<16x512xi32>
      %c512_i32 = arith.constant 512 : i32
      %17 = arith.muli %arg1, %c512_i32 : i32
      %18 = vector.broadcast %17 : i32 to vector<16x512xi32>
      %19 = arith.addi %16, %18 : vector<16x512xi32>
      %c0_12 = arith.constant 0 : index
      %c0_13 = arith.constant 0 : index
      %20 = vector.load %arg5[%c0_12, %c0_13] : memref<16x1xi32, #tpu.memory_space<vmem>>, vector<16x1xi32>
      %21 = vector.broadcast %20 : vector<16x1xi32> to vector<16x512xi32>
      %22 = arith.cmpi eq, %19, %21 : vector<16x512xi32>
      %c0_14 = arith.constant 0 : index
      %c0_15 = arith.constant 0 : index
      %23 = vector.load %arg10[%c0_14, %c0_15] : memref<16x1xf32, #tpu.memory_space<vmem>>, vector<16x1xf32>
      %cst_16 = arith.constant 0.000000e+00 : f32
      %24 = vector.broadcast %cst_16 : f32 to vector<16x512xf32>
      %25 = arith.select %22, %15, %24 : vector<16x512xi1>, vector<16x512xf32>
      %cst_17 = arith.constant dense<0.000000e+00> : vector<16xf32>
      %26 = vector.multi_reduction <add>, %25, %cst_17 [1] : vector<16x512xf32> to vector<16xf32>
      %27 = vector.shape_cast %26 : vector<16xf32> to vector<16x1xf32>
      %28 = arith.addf %23, %27 : vector<16x1xf32>
      %c0_18 = arith.constant 0 : index
      %c0_19 = arith.constant 0 : index
      %29 = vector.load %arg10[%c0_18, %c0_19] : memref<16x1xf32, #tpu.memory_space<vmem>>, vector<16x1xf32>
      tpu.vector_store %arg10[%c0_18, %c0_19], %28 {strides = array<i32>} : memref<16x1xf32, #tpu.memory_space<vmem>>, vector<16x1xf32>,
      %c0_20 = arith.constant 0 : index
      %c0_21 = arith.constant 0 : index
      %30 = vector.load %arg8[%c0_20, %c0_21] : memref<16x1xf32, #tpu.memory_space<vmem>>, vector<16x1xf32>
      %cst_22 = arith.constant dense<0xFF800000> : vector<16xf32>
      %31 = vector.multi_reduction <maximumf>, %15, %cst_22 [1] : vector<16x512xf32> to vector<16xf32>
      %32 = vector.shape_cast %31 : vector<16xf32> to vector<16x1xf32>
      %33 = arith.maximumf %30, %32 : vector<16x1xf32>
      %c0_23 = arith.constant 0 : index
      %c0_24 = arith.constant 0 : index
      %34 = vector.load %arg9[%c0_23, %c0_24] : memref<16x1xf32, #tpu.memory_space<vmem>>, vector<16x1xf32>
      %35 = arith.subf %30, %33 : vector<16x1xf32>
      %36 = math.exp %35 : vector<16x1xf32>
      %37 = arith.mulf %34, %36 : vector<16x1xf32>
      %38 = vector.broadcast %33 : vector<16x1xf32> to vector<16x512xf32>
      %39 = arith.subf %15, %38 : vector<16x512xf32>
      %40 = math.exp %39 : vector<16x512xf32>
      %cst_25 = arith.constant dense<0.000000e+00> : vector<16xf32>
      %41 = vector.multi_reduction <add>, %40, %cst_25 [1] : vector<16x512xf32> to vector<16xf32>
      %42 = vector.shape_cast %41 : vector<16xf32> to vector<16x1xf32>
      %43 = arith.addf %37, %42 : vector<16x1xf32>
      %c0_26 = arith.constant 0 : index
      %c0_27 = arith.constant 0 : index
      %44 = vector.load %arg9[%c0_26, %c0_27] : memref<16x1xf32, #tpu.memory_space<vmem>>, vector<16x1xf32>
      tpu.vector_store %arg9[%c0_26, %c0_27], %43 {strides = array<i32>} : memref<16x1xf32, #tpu.memory_space<vmem>>, vector<16x1xf32>,
      %c0_28 = arith.constant 0 : index
      %c0_29 = arith.constant 0 : index
      %45 = vector.load %arg8[%c0_28, %c0_29] : memref<16x1xf32, #tpu.memory_space<vmem>>, vector<16x1xf32>
      tpu.vector_store %arg8[%c0_28, %c0_29], %33 {strides = array<i32>} : memref<16x1xf32, #tpu.memory_space<vmem>>, vector<16x1xf32>,
      %c0_i32_30 = arith.constant 0 : i32
      %46 = arith.cmpi eq, %arg1, %c0_i32_30 : i32
      %47 = arith.extui %46 : i1 to i32
      %c0_i32_31 = arith.constant 0 : i32
      %48 = arith.cmpi ne, %47, %c0_i32_31 : i32
      scf.if %48 {
        %c0_32 = arith.constant 0 : index
        %c0_33 = arith.constant 0 : index
        %49 = vector.load %arg8[%c0_32, %c0_33] : memref<16x1xf32, #tpu.memory_space<vmem>>, vector<16x1xf32>
        %c0_34 = arith.constant 0 : index
        %c0_35 = arith.constant 0 : index
        %50 = vector.load %arg9[%c0_34, %c0_35] : memref<16x1xf32, #tpu.memory_space<vmem>>, vector<16x1xf32>
        %51 = math.log %50 : vector<16x1xf32>
        %52 = arith.addf %49, %51 : vector<16x1xf32>
        %c0_36 = arith.constant 0 : index
        %c0_37 = arith.constant 0 : index
        %53 = vector.load %arg10[%c0_36, %c0_37] : memref<16x1xf32, #tpu.memory_space<vmem>>, vector<16x1xf32>
        %54 = arith.subf %52, %53 : vector<16x1xf32>
        %c0_38 = arith.constant 0 : index
        %c0_39 = arith.constant 0 : index
        %55 = vector.load %arg7[%c0_38, %c0_39] : memref<16x1xf32, #tpu.memory_space<vmem>>, vector<16x1xf32>
        tpu.vector_store %arg7[%c0_38, %c0_39], %54 {strides = array<i32>} : memref<16x1xf32, #tpu.memory_space<vmem>>, vector<16x1xf32>,
      } else {
      }
    } else {
    }
    return
  }
  func.func @transform_0(%arg0: i32, %arg1: i32, %arg2: i32) -> (i32, i32) {
    %c0_i32 = arith.constant 0 : i32
    return %arg0, %arg2 : i32, i32
  }
  func.func @transform_1(%arg0: i32, %arg1: i32, %arg2: i32) -> (i32, i32) {
    %c0_i32 = arith.constant 0 : i32
    return %arg1, %arg2 : i32, i32
  }
  func.func @transform_2(%arg0: i32, %arg1: i32, %arg2: i32) -> (i32, i32) {
    %c0_i32 = arith.constant 0 : i32
    %c0_i32_0 = arith.constant 0 : i32
    return %arg0, %c0_i32 : i32, i32
  }
  func.func @transform_3(%arg0: i32, %arg1: i32, %arg2: i32) -> (i32, i32) {
    %c0_i32 = arith.constant 0 : i32
    return %arg0, %arg1 : i32, i32
  }
  func.func @transform_4(%arg0: i32, %arg1: i32, %arg2: i32) -> (i32, i32) {
    %c0_i32 = arith.constant 0 : i32
    %c0_i32_0 = arith.constant 0 : i32
    return %arg0, %c0_i32 : i32, i32
  }
}

</mosaic_0001>

<bundles_post_ra>
// kernel: tpu_custom_call.1
= control target key start
LH: loop header
LB: loop body
LE: loop exit
PB: predicated region body
PF: predicated region fallthrough
CT: control target
= control target key end

     0   :  { %10 = vsyncpa [#allocation6], 0  ;;  %s1137_s0 = inlined_call_operand.vmem [shape: bf16[16,256], index: 0, kind: input, shape index: {}]   ;;  %s1138_s1 = inlined_call_operand.hbm [shape: bf16[512,256], index: 1, kind: input, shape index: {}]   ;;  %s1139_s2 = inlined_call_operand.vmem [shape: s32[16,1], index: 2, kind: input, shape index: {}]   ;;  %s1140_s3 = inlined_call_operand.hbm [shape: f32[16,512], index: 3, kind: output, shape index: {0}]   ;;  %s1141_s4 = inlined_call_operand.vmem [shape: f32[16,1], index: 4, kind: output, shape index: {1}]  }
   0x1   :  { %11 = vsyncpa [#allocation7], 0  ;;  %s985_s15 = smov [#allocation5]  }
   0x2   :  { %s19_s16 = sshll.u32 %s985_s15, 4  ;;  %s20_s16 = int_to_ptr.vmem [resolvable:$true] %s19_s16 }
   0x3   :  { %s949_s17 = scalar_lea.vmem %s20_s16, 8192  ;;  %p954_p1 = scmp.lt.s32.totalorder %s20_s16, %s20_s16 }
   0x4   :  { %p950_p0 = scmp.ne.s32.totalorder %s20_s16, %s949_s17  ;;  %p955_p2 = scmp.lt.s32.totalorder %s949_s17, %s949_s17 }
   0x6   :  { %p956_p3 = por %p955_p2, %p954_p1 }
   0x8   :  { %p957_p4 = pnand %p956_p3, %p950_p0 }
   0xa   :  { %960 = shalt.err (!%p957_p4)
}
   0xb   :  { %s986_s18 = smov 128   ;;  %s987_s19 = smov 8  }
   0xc   :  { %25 = dma.hbm_to_vmem [thread:$0]  %s1138_s1, 8192, %s20_s16, [#allocation6], %s986_s18, %s986_s18, %s987_s19  }
   0xd   :  { %981 = dma.done.wait [#allocation6], 8192  }
   0xe   :  { %982 = vsyncadd [#allocation6], 4294959104  ;;  %v818_v0 = vld [vmem:[#allocation5 + $0x74] ss:$8 sps:$4 sm:$0xff]   ;;  %v822_v2 = vld [vmem:[#allocation5 + $0x70] ss:$8 sps:$4 sm:$0xff]  }
   0xf   :  { %v820_v1 = vld [vmem:[#allocation5 + $0x174] ss:$8 sps:$4 sm:$0xff]   ;;  %427 = vmatprep.subr.bf16.mxu0 %v818_v0  ;;  %v823_v3 = vld [vmem:[#allocation5 + $0x170] ss:$8 sps:$4 sm:$0xff]   ;;  %v824_v4 = vld [vmem:[#allocation5 + $0x64] ss:$8 sps:$4 sm:$0xff]  }
  0x10   :  { %470 = vmatprep.subr.bf16.mxu1 %v820_v1  ;;  %428 = vmatpush1.bf16.xpose.msra.mxu0 %v822_v2  ;;  %v826_v5 = vld [vmem:[#allocation5 + $0x164] ss:$8 sps:$4 sm:$0xff]   ;;  %v828_v6 = vld [vmem:[#allocation5 + $0x60] ss:$8 sps:$4 sm:$0xff]   ;;  %v830_v8 = vld [vmem:[#allocation5 + $0x54] ss:$8 sps:$4 sm:$0xff]  }
  0x11   :  { %471 = vmatpush1.bf16.xpose.msra.mxu1 %v823_v3  ;;  %429 = vmatprep.subr.bf16.mxu0 %v824_v4  ;;  %v829_v7 = vld [vmem:[#allocation5 + $0x160] ss:$8 sps:$4 sm:$0xff]   ;;  %v832_v9 = vld [vmem:[#allocation5 + $0x154] ss:$8 sps:$4 sm:$0xff]   ;;  %v834_v10 = vld [vmem:[#allocation5 + $0x50] ss:$8 sps:$4 sm:$0xff]  }
  0x12   :  { %472 = vmatprep.subr.bf16.mxu1 %v826_v5  ;;  %v835_v11 = vld [vmem:[#allocation5 + $0x150] ss:$8 sps:$4 sm:$0xff]   ;;  %v836_v12 = vld [vmem:[#allocation5 + $0x44] ss:$8 sps:$4 sm:$0xff]   ;;  %v840_v14 = vld [vmem:[#allocation5 + $0x40] ss:$8 sps:$4 sm:$0xff]  }
  0x13   :  { %v838_v13 = vld [vmem:[#allocation5 + $0x144] ss:$8 sps:$4 sm:$0xff]   ;;  %v841_v15 = vld [vmem:[#allocation5 + $0x140] ss:$8 sps:$4 sm:$0xff]   ;;  %v842_v16 = vld [vmem:[#allocation5 + $0x34] ss:$8 sps:$4 sm:$0xff]  }
  0x14   :  { %v844_v17 = vld [vmem:[#allocation5 + $0x134] ss:$8 sps:$4 sm:$0xff]   ;;  %v846_v18 = vld [vmem:[#allocation5 + $0x30] ss:$8 sps:$4 sm:$0xff]   ;;  %v848_v20 = vld [vmem:[#allocation5 + $0x24] ss:$8 sps:$4 sm:$0xff]  }
  0x15   :  { %v847_v19 = vld [vmem:[#allocation5 + $0x130] ss:$8 sps:$4 sm:$0xff]   ;;  %v850_v21 = vld [vmem:[#allocation5 + $0x124] ss:$8 sps:$4 sm:$0xff]   ;;  %v852_v22 = vld [vmem:[#allocation5 + $0x20] ss:$8 sps:$4 sm:$0xff]  }
  0x16   :  { %v853_v23 = vld [vmem:[#allocation5 + $0x120] ss:$8 sps:$4 sm:$0xff]   ;;  %v854_v24 = vld [vmem:[#allocation5 + $0x14] ss:$8 sps:$4 sm:$0xff]   ;;  %v858_v27 = vld [vmem:[#allocation5 + $0x10] ss:$8 sps:$4 sm:$0xff]  }
  0x17   :  { %v856_v25 = vld [vmem:[#allocation5 + $0x114] ss:$8 sps:$4 sm:$0xff]   ;;  %v859_v28 = vld [vmem:[#allocation5 + $0x110] ss:$8 sps:$4 sm:$0xff]   ;;  %v860_v29 = vld [vmem:[#allocation5 + $0x4] ss:$8 sps:$4 sm:$0xff]  }
  0x18   :  { %430 = vmatpush1.bf16.xpose.msra.mxu0 %v828_v6  ;;  %v916_v26 = vld [vmem:[%s1137_s0 + $0x4] ss:$8 sps:$4 sm:$0xff]   ;;  %v862_v30 = vld [vmem:[#allocation5 + $0x104] ss:$8 sps:$4 sm:$0xff]   ;;  %v864_v31 = vld [vmem:[#allocation5] ss:$8 sps:$4 sm:$0xff]  }
  0x19   :  { %473 = vmatpush1.bf16.xpose.msra.mxu1 %v829_v7  ;;  %431 = vmatprep.subr.bf16.mxu0 %v830_v8  ;;  %v865_v32 = vld [vmem:[#allocation5 + $0x100] ss:$8 sps:$4 sm:$0xff]   ;;  %v866_v33 = vld [vmem:[#allocation5 + $0xf4] ss:$8 sps:$4 sm:$0xff]   ;;  %v870_v35 = vld [vmem:[#allocation5 + $0xf0] ss:$8 sps:$4 sm:$0xff]  }
  0x1a   :  { %474 = vmatprep.subr.bf16.mxu1 %v832_v9  ;;  %459 = vmatprep.mubr.bf16.mxu0 %v916_v26  ;;  %v868_v34 = vld [vmem:[#allocation5 + $0x1f4] ss:$8 sps:$4 sm:$0xff]   ;;  %v871_v36 = vld [vmem:[#allocation5 + $0x1f0] ss:$8 sps:$4 sm:$0xff]   ;;  %v872_v37 = vld [vmem:[#allocation5 + $0xe4] ss:$8 sps:$4 sm:$0xff]  }
  0x1b   :  { %502 = vmatprep.mubr.bf16.mxu1 %v916_v26  ;;  %v874_v38 = vld [vmem:[#allocation5 + $0x1e4] ss:$8 sps:$4 sm:$0xff]   ;;  %v876_v39 = vld [vmem:[#allocation5 + $0xe0] ss:$8 sps:$4 sm:$0xff]   ;;  %v878_v41 = vld [vmem:[#allocation5 + $0xd4] ss:$8 sps:$4 sm:$0xff]  }
  0x1c   :  { %v877_v40 = vld [vmem:[#allocation5 + $0x1e0] ss:$8 sps:$4 sm:$0xff]   ;;  %v880_v42 = vld [vmem:[#allocation5 + $0x1d4] ss:$8 sps:$4 sm:$0xff]   ;;  %v882_v43 = vld [vmem:[#allocation5 + $0xd0] ss:$8 sps:$4 sm:$0xff]  }
  0x1d   :  { %v883_v44 = vld [vmem:[#allocation5 + $0x1d0] ss:$8 sps:$4 sm:$0xff]   ;;  %v884_v45 = vld [vmem:[#allocation5 + $0xc4] ss:$8 sps:$4 sm:$0xff]   ;;  %v888_v47 = vld [vmem:[#allocation5 + $0xc0] ss:$8 sps:$4 sm:$0xff]  }
  0x1e   :  { %v886_v46 = vld [vmem:[#allocation5 + $0x1c4] ss:$8 sps:$4 sm:$0xff]   ;;  %v889_v48 = vld [vmem:[#allocation5 + $0x1c0] ss:$8 sps:$4 sm:$0xff]   ;;  %v890_v49 = vld [vmem:[#allocation5 + $0xb4] ss:$8 sps:$4 sm:$0xff]  }
  0x1f   :  { %v892_v50 = vld [vmem:[#allocation5 + $0x1b4] ss:$8 sps:$4 sm:$0xff]   ;;  %v894_v51 = vld [vmem:[#allocation5 + $0xb0] ss:$8 sps:$4 sm:$0xff]   ;;  %v896_v53 = vld [vmem:[#allocation5 + $0xa4] ss:$8 sps:$4 sm:$0xff]  }
  0x20   :  { %432 = vmatpush1.bf16.xpose.msra.mxu0 %v834_v10  ;;  %v895_v52 = vld [vmem:[#allocation5 + $0x1b0] ss:$8 sps:$4 sm:$0xff]   ;;  %v898_v54 = vld [vmem:[#allocation5 + $0x1a4] ss:$8 sps:$4 sm:$0xff]   ;;  %v900_v55 = vld [vmem:[#allocation5 + $0xa0] ss:$8 sps:$4 sm:$0xff]  }
  0x21   :  { %475 = vmatpush1.bf16.xpose.msra.mxu1 %v835_v11  ;;  %433 = vmatprep.subr.bf16.mxu0 %v836_v12  ;;  %v901_v56 = vld [vmem:[#allocation5 + $0x1a0] ss:$8 sps:$4 sm:$0xff]   ;;  %v902_v57 = vld [vmem:[#allocation5 + $0x94] ss:$8 sps:$4 sm:$0xff]   ;;  %v906_v59 = vld [vmem:[#allocation5 + $0x90] ss:$8 sps:$4 sm:$0xff]  }
  0x22   :  { %476 = vmatprep.subr.bf16.mxu1 %v838_v13  ;;  %v904_v58 = vld [vmem:[#allocation5 + $0x194] ss:$8 sps:$4 sm:$0xff]   ;;  %v907_v60 = vld [vmem:[#allocation5 + $0x190] ss:$8 sps:$4 sm:$0xff]   ;;  %v908_v61 = vld [vmem:[#allocation5 + $0x84] ss:$8 sps:$4 sm:$0xff]  }
  0x23   :  { %v910_v62 = vld [vmem:[#allocation5 + $0x184] ss:$8 sps:$4 sm:$0xff]   ;;  %v912_v63 = vld [vmem:[#allocation5 + $0x80] ss:$8 sps:$4 sm:$0xff]   ;;  %v914_v1 = vld [vmem:[%s1137_s0] ss:$8 sps:$4 sm:$0xff]  }
  0x24   :  { %v913_v0 = vld [vmem:[#allocation5 + $0x180] ss:$8 sps:$4 sm:$0xff]   ;;  %v988_v2 = vmov 0   ;;  %vm560_vm0 = vcmask 7168   ;;  %v989_v3 = vmov -inf  }
  0x25   :  { %817 = vset.pattern.permute.xlu0 %v988_v2  ;;  %816 = vset.pattern.permute.xlu1 %v988_v2  ;;  %561 = vst.msk [vmem:[#allocation2] sm:$0xff] %vm560_vm0, %v989_v3  ;;  %562 = vst.msk [vmem:[#allocation2 + $0x8] sm:$0xff] %vm560_vm0, %v989_v3 }
  0x28   :  { %434 = vmatpush1.bf16.xpose.msra.mxu0 %v840_v14 }
  0x29   :  { %477 = vmatpush1.bf16.xpose.msra.mxu1 %v841_v15  ;;  %435 = vmatprep.subr.bf16.mxu0 %v842_v16 }
  0x2a   :  { %478 = vmatprep.subr.bf16.mxu1 %v844_v17 }
  0x30   :  { %436 = vmatpush1.bf16.xpose.msra.mxu0 %v846_v18  ;;  %v586_v18 = vld [vmem:[%s1139_s2] sm:$0xff] }
  0x31   :  { %479 = vmatpush1.bf16.xpose.msra.mxu1 %v847_v19  ;;  %437 = vmatprep.subr.bf16.mxu0 %v848_v20  ;;  %v990_v19 = vmov 0.0   ;;  %v1069_v20 = vld [vmem:[#allocation2] sm:$0xff] }
  0x32   :  { %480 = vmatprep.subr.bf16.mxu1 %v850_v21  ;;  %565 = vst.msk [vmem:[#allocation4] sm:$0xff] %vm560_vm0, %v990_v19  ;;  %563 = vst.msk [vmem:[#allocation3] sm:$0xff] %vm560_vm0, %v990_v19 }
  0x33   :  { %564 = vst.msk [vmem:[#allocation3 + $0x8] sm:$0xff] %vm560_vm0, %v990_v19  ;;  %566 = vst.msk [vmem:[#allocation4 + $0x8] sm:$0xff] %vm560_vm0, %v990_v19 }
  0x38   :  { %438 = vmatpush1.bf16.xpose.msra.mxu0 %v852_v22 }
  0x39   :  { %481 = vmatpush1.bf16.xpose.msra.mxu1 %v853_v23  ;;  %439 = vmatprep.subr.bf16.mxu0 %v854_v24  ;;  %v575_v23 = vlaneseq  ;;  %v1074_v24 = vld [vmem:[#allocation2 + $0x8] sm:$0xff] }
  0x3a   :  { %482 = vmatprep.subr.bf16.mxu1 %v856_v25 }
  0x40   :  { %440 = vmatpush1.bf16.xpose.msra.mxu0 %v858_v27 }
  0x41   :  { %483 = vmatpush1.bf16.xpose.msra.mxu1 %v859_v28  ;;  %441 = vmatprep.subr.bf16.mxu0 %v860_v29  ;;  %v576_v28 = vand.u32 127, %v575_v23 }
  0x42   :  { %484 = vmatprep.subr.bf16.mxu1 %v862_v30  ;;  %v587_v30 = vld [vmem:[%s1139_s2 + $0x8] sm:$0xff]  ;;  %s991_s2 = smov [#allocation8]  }
  0x43   :  { %s725_s28 = sshll.u32 %s991_s2, 4  ;;  %s726_s28 = int_to_ptr.vmem [resolvable:$true] %s725_s28 }
  0x44   :  { %s961_s29 = scalar_lea.vmem %s726_s28, 1024  ;;  %p966_p6 = scmp.lt.s32.totalorder %s726_s28, %s726_s28 }
  0x45   :  { %p962_p5 = scmp.ne.s32.totalorder %s726_s28, %s961_s29  ;;  %p967_p7 = scmp.lt.s32.totalorder %s961_s29, %s961_s29 }
  0x47   :  { %p968_p8 = por %p967_p7, %p966_p6 }
  0x48   :  { %442 = vmatpush1.bf16.xpose.msra.mxu0 %v864_v31  ;;  %v577_v31 = vadd.s32 128, %v576_v28 }
  0x49   :  { %485 = vmatpush1.bf16.xpose.msra.mxu1 %v865_v32  ;;  %443 = vmatprep.subr.bf16.mxu0 %v866_v33  ;;  %v1092_v32 = vadd.s32 256, %v576_v28  ;;  %v1094_v33 = vadd.s32 384, %v576_v28  ;;  %p969_p9 = pnand %p968_p8, %p962_p5 }
  0x4a   :  { %486 = vmatprep.subr.bf16.mxu1 %v868_v34 }
  0x50   :  { %444 = vmatpush2.bf16.xpose.msra.mxu0 %v870_v35 }
  0x51   :  { %487 = vmatpush2.bf16.xpose.msra.mxu1 %v871_v36  ;;  %445 = vmatprep.subr.bf16.mxu0 %v872_v37 }
  0x52   :  { %488 = vmatprep.subr.bf16.mxu1 %v874_v38 }
  0x58   :  { %446 = vmatpush2.bf16.xpose.msra.mxu0 %v876_v39 }
  0x59   :  { %489 = vmatpush2.bf16.xpose.msra.mxu1 %v877_v40  ;;  %447 = vmatprep.subr.bf16.mxu0 %v878_v41 }
  0x5a   :  { %490 = vmatprep.subr.bf16.mxu1 %v880_v42 }
  0x60   :  { %448 = vmatpush2.bf16.xpose.msra.mxu0 %v882_v43 }
  0x61   :  { %491 = vmatpush2.bf16.xpose.msra.mxu1 %v883_v44  ;;  %449 = vmatprep.subr.bf16.mxu0 %v884_v45 }
  0x62   :  { %492 = vmatprep.subr.bf16.mxu1 %v886_v46 }
  0x68   :  { %450 = vmatpush2.bf16.xpose.msra.mxu0 %v888_v47 }
  0x69   :  { %493 = vmatpush2.bf16.xpose.msra.mxu1 %v889_v48  ;;  %451 = vmatprep.subr.bf16.mxu0 %v890_v49 }
  0x6a   :  { %494 = vmatprep.subr.bf16.mxu1 %v892_v50 }
  0x70   :  { %452 = vmatpush2.bf16.xpose.msra.mxu0 %v894_v51 }
  0x71   :  { %495 = vmatpush2.bf16.xpose.msra.mxu1 %v895_v52  ;;  %453 = vmatprep.subr.bf16.mxu0 %v896_v53 }
  0x72   :  { %496 = vmatprep.subr.bf16.mxu1 %v898_v54 }
  0x78   :  { %454 = vmatpush2.bf16.xpose.msra.mxu0 %v900_v55 }
  0x79   :  { %497 = vmatpush2.bf16.xpose.msra.mxu1 %v901_v56  ;;  %455 = vmatprep.subr.bf16.mxu0 %v902_v57 }
  0x7a   :  { %498 = vmatprep.subr.bf16.mxu1 %v904_v58 }
  0x80   :  { %456 = vmatpush2.bf16.xpose.msra.mxu0 %v906_v59 }
  0x81   :  { %499 = vmatpush2.bf16.xpose.msra.mxu1 %v907_v60  ;;  %457 = vmatprep.subr.bf16.mxu0 %v908_v61 }
  0x82   :  { %500 = vmatprep.subr.bf16.mxu1 %v910_v62 }
  0x88   :  { %458 = vmatpush2.bf16.xpose.msra.mxu0 %v912_v63 }
  0x89   :  { %501 = vmatpush2.bf16.xpose.msra.mxu1 %v913_v0 }
  0x8f   :  { %460 = vmatmul.mubr.bf16.vlgmr.msra.gmra.mxu0 %v914_v1 }
  0x90   :  { %503 = vmatmul.mubr.bf16.vlgmr.msra.gmra.mxu1 %v914_v1 }
 0x14f   :  { %v1030_v4 = vpop.f32.mrf.mxu0 }
 0x150   :  { %v1032_v5 = vpop.f32.mrf.mxu1  ;;  %517 = vst [vmem:[#allocation8] sm:$0xff] %v1030_v4 }
 0x151   :  { %519 = vst [vmem:[#allocation8 + $0x10] sm:$0xff] %v1032_v5  ;;  %v1036_v6 = vpop.f32.mrf.mxu0  ;;  %v629_v8 = vmax.f32 %v1030_v4, %v1032_v5 }
 0x152   :  { %v1038_v7 = vpop.f32.mrf.mxu1  ;;  %518 = vst [vmem:[#allocation8 + $0x8] sm:$0xff] %v1036_v6 }
 0x153   :  { %520 = vst [vmem:[#allocation8 + $0x18] sm:$0xff] %v1038_v7  ;;  %v630_v9 = vmax.f32 %v1036_v6, %v1038_v7  ;;  %v1046_v10 = vpop.f32.mrf.mxu0 }
 0x154   :  { %v1048_v11 = vpop.f32.mrf.mxu1  ;;  %521 = vst [vmem:[#allocation8 + $0x20] sm:$0xff] %v1046_v10 }
 0x155   :  { %523 = vst [vmem:[#allocation8 + $0x30] sm:$0xff] %v1048_v11  ;;  %v631_v12 = vmax.f32 %v629_v8, %v630_v9  ;;  %v1052_v13 = vpop.f32.mrf.mxu0  ;;  %v634_v15 = vmax.f32 %v1046_v10, %v1048_v11 }
 0x156   :  { %v1054_v14 = vpop.f32.mrf.mxu1  ;;  %522 = vst [vmem:[#allocation8 + $0x28] sm:$0xff] %v1052_v13 }
 0x157   :  { %524 = vst [vmem:[#allocation8 + $0x38] sm:$0xff] %v1054_v14  ;;  %632 = vmax.xlane.f32.xlu0 %v631_v12  ;;  %v635_v16 = vmax.f32 %v1052_v13, %v1054_v14 }
 0x159   :  { %v636_v17 = vmax.f32 %v634_v15, %v635_v16 }
 0x15b   :  { %637 = vmax.xlane.f32.xlu0 %v636_v17 }
 0x171   :  { %589 = vperm.xlu0 %817, %v586_v18  }
 0x1e0   :  { %v633_v21 = vpop.xlane.xlu0 %632 }
 0x1e1   :  { %v1072_v22 = vmax.f32 %v1069_v20, %v633_v21 }
 0x1e3   :  { %v643_v25 = vsub.f32 %v1069_v20, %v1072_v22  ;;  %699 = vst.msk [vmem:[#allocation2] sm:$0xff] %vm560_vm0, %v1072_v22  ;;  %653 = vperm.xlu1 %816, %v1072_v22  }
 0x1e4   :  { %v638_v26 = vpop.xlane.xlu0 %637 }
 0x1e5   :  { %v1082_v27 = vmax.f32 %v1074_v24, %v638_v26 }
 0x1e7   :  { %v644_v29 = vsub.f32 %v1074_v24, %v1082_v27  ;;  %700 = vst.msk [vmem:[#allocation2 + $0x8] sm:$0xff] %vm560_vm0, %v1082_v27  ;;  %658 = vperm.xlu1 %816, %v1082_v27  }
 0x1eb   :  { %592 = vperm.xlu1 %816, %v587_v30  }
 0x1ec   :  { %v590_v34 = vpop.permute.xlu0 %589 }
 0x1ed   :  { %vm594_vm1 = vcmp.eq.s32.totalorder %v576_v28, %v590_v34  ;;  %vm595_vm2 = vcmp.eq.s32.totalorder %v577_v31, %v590_v34  ;;  %vm596_vm3 = vcmp.eq.s32.totalorder %v1092_v32, %v590_v34  ;;  %vm597_vm4 = vcmp.eq.s32.totalorder %v1094_v33, %v590_v34 }
 0x1ee   :  { %v604_v35 = vsel %vm594_vm1, %v1030_v4, 0.0  ;;  %v605_v36 = vsel %vm595_vm2, %v1036_v6, 0.0  ;;  %v606_v38 = vsel %vm596_vm3, %v1032_v5, 0.0  ;;  %v607_v40 = vsel %vm597_vm4, %v1038_v7, 0.0 }
 0x1ef   :  { %v612_v37 = vadd.f32 %v605_v36, %v604_v35 }
 0x1f1   :  { %v613_v39 = vadd.f32 %v612_v37, %v606_v38 }
 0x1f3   :  { %v614_v41 = vadd.f32 %v613_v39, %v607_v40 }
 0x1f5   :  { %615 = vadd.xlane.f32.xlu0 %v614_v41 }
 0x25e   :  { %v654_v42 = vpop.permute.xlu1 %653 }
 0x25f   :  { %v661_v43 = vsub.f32 %v1030_v4, %v654_v42  ;;  %v662_v44 = vsub.f32 %v1036_v6, %v654_v42  ;;  %v663_v45 = vsub.f32 %v1032_v5, %v654_v42  ;;  %v664_v46 = vsub.f32 %v1038_v7, %v654_v42 }
 0x261   :  { %v669_v47 = vmul.f32 1.442695, %v661_v43  ;;  %v671_v48 = vmul.f32 1.442695, %v662_v44  ;;  %v673_v49 = vmul.f32 1.442695, %v663_v45 }
 0x262   :  { %v675_v50 = vmul.f32 1.442695, %v664_v46  ;;  %v659_v51 = vpop.permute.xlu1 %658 }
 0x263   :  { %917 = vpow2.f32 %v669_v47  ;;  %v665_v52 = vsub.f32 %v1046_v10, %v659_v51  ;;  %v666_v53 = vsub.f32 %v1052_v13, %v659_v51  ;;  %v667_v54 = vsub.f32 %v1048_v11, %v659_v51 }
 0x264   :  { %919 = vpow2.f32 %v671_v48  ;;  %v668_v55 = vsub.f32 %v1054_v14, %v659_v51 }
 0x265   :  { %921 = vpow2.f32 %v673_v49  ;;  %v677_v56 = vmul.f32 1.442695, %v665_v52  ;;  %v679_v57 = vmul.f32 1.442695, %v666_v53  ;;  %v681_v58 = vmul.f32 1.442695, %v667_v54 }
 0x266   :  { %923 = vpow2.f32 %v675_v50  ;;  %v683_v59 = vmul.f32 1.442695, %v668_v55  ;;  %v593_v60 = vpop.permute.xlu1 %592 }
 0x267   :  { %925 = vpow2.f32 %v677_v56  ;;  %vm598_vm5 = vcmp.eq.s32.totalorder %v576_v28, %v593_v60  ;;  %vm599_vm6 = vcmp.eq.s32.totalorder %v577_v31, %v593_v60  ;;  %vm600_vm7 = vcmp.eq.s32.totalorder %v1092_v32, %v593_v60 }
 0x268   :  { %927 = vpow2.f32 %v679_v57  ;;  %v608_v2 = vsel %vm598_vm5, %v1046_v10, 0.0  ;;  %v609_v3 = vsel %vm599_vm6, %v1052_v13, 0.0  ;;  %v610_v17 = vsel %vm600_vm7, %v1048_v11, 0.0  ;;  %v602_v13 = vld [vmem:[#allocation4] sm:$0xff] }
 0x269   :  { %929 = vpow2.f32 %v681_v58  ;;  %v617_v9 = vadd.f32 %v609_v3, %v608_v2  ;;  %vm601_vm8 = vcmp.eq.s32.totalorder %v1094_v33, %v593_v60 }
 0x26a   :  { %931 = vpow2.f32 %v683_v59  ;;  %v611_v19 = vsel %vm601_vm8, %v1054_v14, 0.0 }
 0x26b   :  { %v618_v10 = vadd.f32 %v617_v9, %v610_v17 }
 0x26d   :  { %v619_v23 = vadd.f32 %v618_v10, %v611_v19 }
 0x270   :  { %v918_v61 = vpop.eup %917 }
 0x271   :  { %v920_v62 = vpop.eup %919 }
 0x272   :  { %v922_v63 = vpop.eup %921  ;;  %v685_v0 = vadd.f32 %v920_v62, %v918_v61 }
 0x273   :  { %v924_v1 = vpop.eup %923 }
 0x274   :  { %v926_v4 = vpop.eup %925  ;;  %v686_v5 = vadd.f32 %v922_v63, %v685_v0 }
 0x275   :  { %v928_v6 = vpop.eup %927 }
 0x276   :  { %v687_v7 = vadd.f32 %v924_v1, %v686_v5  ;;  %v690_v8 = vadd.f32 %v928_v6, %v926_v4  ;;  %v930_v12 = vpop.eup %929 }
 0x277   :  { %v932_v16 = vpop.eup %931 }
 0x278   :  { %688 = vadd.xlane.f32.xlu1 %v687_v7  ;;  %v691_v15 = vadd.f32 %v930_v12, %v690_v8 }
 0x27a   :  { %v692_v18 = vadd.f32 %v932_v16, %v691_v15 }
 0x27c   :  { %693 = vadd.xlane.f32.xlu1 %v692_v18 }
 0x27e   :  { %v616_v21 = vpop.xlane.xlu0 %615 }
 0x27f   :  { %v622_v26 = vadd.f32 %v616_v21, %v602_v13 }
 0x280   :  { %620 = vadd.xlane.f32.xlu1 %v619_v23 }
 0x281   :  { %625 = vst.msk [vmem:[#allocation4] sm:$0xff] %vm560_vm0, %v622_v26 }
 0x282   :  { %972 = shalt.err (!%p969_p9)
}
 0x283   :  { %s992_s30 = smov 512   ;;  %s993_s5 = smov 32   ;;  %v645_v11 = vmul.f32 1.442695, %v643_v25  ;;  %v647_v14 = vmul.f32 1.442695, %v644_v29 }
 0x284   :  { %731 = dma.vmem_to_hbm [thread:$0]  %s726_s28, 1024, %s1140_s3, [#allocation7], %s992_s30, %s992_s30, %s993_s5   ;;  %v641_v30 = vld [vmem:[#allocation3] sm:$0xff]  ;;  %v642_v34 = vld [vmem:[#allocation3 + $0x8] sm:$0xff]  ;;  %v603_v20 = vld [vmem:[#allocation4 + $0x8] sm:$0xff] }
 0x285   :  { %933 = vpow2.f32 %v645_v11  ;;  %v704_v40 = vld [vmem:[#allocation2] sm:$0xff]  ;;  %v705_v46 = vld [vmem:[#allocation2 + $0x8] sm:$0xff] }
 0x286   :  { %935 = vpow2.f32 %v647_v14 }
 0x288   :  { %v714_v43 = vld [vmem:[#allocation4] sm:$0xff] }
 0x292   :  { %v934_v28 = vpop.eup %933 }
 0x293   :  { %v649_v31 = vmul.f32 %v934_v28, %v641_v30  ;;  %v936_v32 = vpop.eup %935 }
 0x294   :  { %v650_v36 = vmul.f32 %v936_v32, %v642_v34 }
 0x301   :  { %v689_v33 = vpop.xlane.xlu1 %688 }
 0x302   :  { %v695_v35 = vadd.f32 %v689_v33, %v649_v31 }
 0x304   :  { %697 = vst.msk [vmem:[#allocation3] sm:$0xff] %vm560_vm0, %v695_v35 }
 0x305   :  { %v694_v37 = vpop.xlane.xlu1 %693 }
 0x306   :  { %v696_v38 = vadd.f32 %v694_v37, %v650_v36 }
 0x308   :  { %698 = vst.msk [vmem:[#allocation3 + $0x8] sm:$0xff] %vm560_vm0, %v696_v38 }
 0x309   :  { %v621_v22 = vpop.xlane.xlu1 %620 }
 0x30a   :  { %v623_v25 = vadd.f32 %v621_v22, %v603_v20 }
 0x30b   :  { %v706_v24 = vld [vmem:[#allocation3] sm:$0xff] }
 0x30c   :  { %937 = vlog2.f32 %v706_v24  ;;  %626 = vst.msk [vmem:[#allocation4 + $0x8] sm:$0xff] %vm560_vm0, %v623_v25 }
 0x30f   :  { %v707_v27 = vld [vmem:[#allocation3 + $0x8] sm:$0xff] }
 0x310   :  { %939 = vlog2.f32 %v707_v27 }
 0x313   :  { %v715_v48 = vld [vmem:[#allocation4 + $0x8] sm:$0xff] }
 0x319   :  { %v938_v29 = vpop.eup %937 }
 0x31a   :  { %v709_v39 = vmul.f32 0.6931472, %v938_v29 }
 0x31c   :  { %v712_v41 = vadd.f32 %v709_v39, %v704_v40 }
 0x31d   :  { %v940_v42 = vpop.eup %939 }
 0x31e   :  { %v716_v44 = vsub.f32 %v712_v41, %v714_v43  ;;  %v711_v45 = vmul.f32 0.6931472, %v940_v42 }
 0x320   :  { %718 = vst.msk [vmem:[%s1141_s4] sm:$0xff] %vm560_vm0, %v716_v44  ;;  %v713_v47 = vadd.f32 %v711_v45, %v705_v46 }
 0x322   :  { %v717_v49 = vsub.f32 %v713_v47, %v715_v48 }
 0x324   :  { %719 = vst.msk [vmem:[%s1141_s4 + $0x8] sm:$0xff] %vm560_vm0, %v717_v49 }
 0x325   :  { %983 = dma.done.wait [#allocation7], 1024  }
 0x326   :  { %984 = vsyncadd [#allocation7], 4294966272 }
 0x327   :  { %739 = vsyncpa [#allocation6], 1 }
 0x328   :  { %740 = vsyncpa [#allocation7], 1 }

</bundles_post_ra>
